<compile_context>
chip_gen: v7x
topology: tpu7x:2x2x1
jax: 0.10.0
libtpu: 0.0.40
codegen_flags: <defaults>
</compile_context>

<pallas_src>
import jax
import jax.numpy as jnp
from jax.experimental import pallas as pl
from jax.experimental.pallas import tpu as pltpu


def mlp_kernel(x_ref, w1_ref, b1_ref, w2_ref, b2_ref, o_ref):
    # x_ref : (in_f, TB) f32 VMEM tile, batch on lanes
    # w1_ref: (in_f, hid) f32 SMEM   b1_ref: (hid,) f32 SMEM
    # w2_ref: (hid, out_f) f32 SMEM  b2_ref: (out_f,) f32 SMEM
    # o_ref : (out_f, TB) f32 VMEM tile
    in_f = x_ref.shape[0]
    hid = w1_ref.shape[1]
    out_f = w2_ref.shape[1]

    x = x_ref[...]                                  # (in_f, TB)
    xr = [x[k:k + 1, :] for k in range(in_f)]       # static sublane slices, (1, TB)

    # Layer 1 + ReLU: hid chains of in_f scalar-broadcast FMAs on the VPU.
    h = []
    for j in range(hid):
        acc = xr[0] * w1_ref[0, j]
        for k in range(1, in_f):
            acc = acc + xr[k] * w1_ref[k, j]
        h.append(jnp.maximum(acc + b1_ref[j], 0.0))

    # Layer 2: out_f chains of hid scalar-broadcast FMAs.
    rows = []
    for m in range(out_f):
        acc = h[0] * w2_ref[0, m]
        for j in range(1, hid):
            acc = acc + h[j] * w2_ref[j, m]
        rows.append(acc + b2_ref[m])

    # Single full-tile, lane-dense store.
    o_ref[...] = jnp.concatenate(rows, axis=0).astype(o_ref.dtype)


def mlp_forward(x, w1, b1, w2, b2, *, tb=4096):
    """x: (B, in_f) f32 -> logits (B, out_f) f32. Weights stored as (in, out)."""
    B, in_f = x.shape
    hid = w1.shape[1]
    out_f = w2.shape[1]

    # Lane-dense layout: put batch on the lane axis.
    x_t = x.T                                                # (in_f, B)
    tb_eff = min(tb, ((B + 127) // 128) * 128)               # lane tile, multiple of 128
    b_pad = ((B + tb_eff - 1) // tb_eff) * tb_eff
    if b_pad != B:
        x_t = jnp.pad(x_t, ((0, 0), (0, b_pad - B)))

    grid = (b_pad // tb_eff,)

    out_t = pl.pallas_call(
        mlp_kernel,
        out_shape=jax.ShapeDtypeStruct((out_f, b_pad), jnp.float32),
        grid=grid,
        in_specs=[
            # x tile streams over the batch/lane axis; features are the full dim.
            pl.BlockSpec((in_f, tb_eff), lambda i: (0, i)),
            # Tiny weights/biases: resident SMEM scalars (no padded VMEM tiles).
            pl.BlockSpec(memory_space=pltpu.MemorySpace.SMEM),   # w1 (in_f, hid)
            pl.BlockSpec(memory_space=pltpu.MemorySpace.SMEM),   # b1 (hid,)
            pl.BlockSpec(memory_space=pltpu.MemorySpace.SMEM),   # w2 (hid, out_f)
            pl.BlockSpec(memory_space=pltpu.MemorySpace.SMEM),   # b2 (out_f,)
        ],
        out_specs=pl.BlockSpec((out_f, tb_eff), lambda i: (0, i)),
        compiler_params=pltpu.CompilerParams(
            dimension_semantics=("parallel",)),                  # shard batch over TCs (v7x)
    )(x_t, w1, b1, w2, b2)

    return out_t[:, :B].T                                        # back to (B, out_f)


def init_params(key, input_size=4, hidden=3, out=2):
    """Deterministic init mimicking PyTorch Linear default (U[-1/sqrt(fan_in), 1/sqrt(fan_in)]).
    Weights stored as (in, out) so the forward computes x @ W directly."""
    k1, k2, k3, k4 = jax.random.split(key, 4)
    bound1 = 1.0 / jnp.sqrt(input_size)
    bound2 = 1.0 / jnp.sqrt(hidden)
    w1 = jax.random.uniform(k1, (input_size, hidden), jnp.float32, -bound1, bound1)
    b1 = jax.random.uniform(k2, (hidden,), jnp.float32, -bound1, bound1)
    w2 = jax.random.uniform(k3, (hidden, out), jnp.float32, -bound2, bound2)
    b2 = jax.random.uniform(k4, (out,), jnp.float32, -bound2, bound2)
    return w1, b1, w2, b2


if __name__ == "__main__":
    key = jax.random.PRNGKey(0)
    k_x, k_p = jax.random.split(key)

    batch, input_size = 8, 4
    x = jax.random.normal(k_x, (batch, input_size), jnp.float32)
    w1, b1, w2, b2 = init_params(k_p, input_size=input_size)

    logits = mlp_forward(x, w1, b1, w2, b2)
    logits = jax.block_until_ready(logits)

    # Pure-JAX reference check.
    ref = jnp.maximum(x @ w1 + b1, 0.0) @ w2 + b2
    assert logits.shape == (batch, 2)
    assert jnp.allclose(logits, ref, atol=1e-5, rtol=1e-5)

    print("KERNEL_OK")
</pallas_src>

<mosaic_0001>
module attributes {stable_mosaic.version = 11 : i64} {
  func.func @mlp_kernel(%arg0: i32, %arg1: memref<4x128xf32, #tpu.memory_space<vmem>>, %arg2: memref<4x3xf32, #tpu.memory_space<smem>>, %arg3: memref<3xf32, #tpu.memory_space<smem>>, %arg4: memref<3x2xf32, #tpu.memory_space<smem>>, %arg5: memref<2xf32, #tpu.memory_space<smem>>, %arg6: memref<2x128xf32, #tpu.memory_space<vmem>>) attributes {dimension_semantics = [#tpu.dimension_semantics<parallel>], iteration_bounds = array<i64: 1>, scalar_prefetch = 0 : i64, scratch_operands = 0 : i64, tpu.core_type = #tpu.core_type<tc>, window_params = [{transform_indices = @transform_0, window_bounds = array<i64: 4, 128>}, {transform_indices = @transform_1, window_bounds = array<i64: 4, 3>}, {transform_indices = @transform_2, window_bounds = array<i64: 3>}, {transform_indices = @transform_3, window_bounds = array<i64: 3, 2>}, {transform_indices = @transform_4, window_bounds = array<i64: 2>}, {transform_indices = @transform_5, window_bounds = array<i64: 2, 128>}]} {
    %c0 = arith.constant 0 : index
    %c0_0 = arith.constant 0 : index
    %0 = vector.load %arg1[%c0, %c0_0] : memref<4x128xf32, #tpu.memory_space<vmem>>, vector<4x128xf32>
    %1 = vector.extract_strided_slice %0 {offsets = [0, 0], sizes = [1, 128], strides = [1, 1]} : vector<4x128xf32> to vector<1x128xf32>
    %2 = vector.extract_strided_slice %0 {offsets = [1, 0], sizes = [1, 128], strides = [1, 1]} : vector<4x128xf32> to vector<1x128xf32>
    %3 = vector.extract_strided_slice %0 {offsets = [2, 0], sizes = [1, 128], strides = [1, 1]} : vector<4x128xf32> to vector<1x128xf32>
    %4 = vector.extract_strided_slice %0 {offsets = [3, 0], sizes = [1, 128], strides = [1, 1]} : vector<4x128xf32> to vector<1x128xf32>
    %c0_1 = arith.constant 0 : index
    %c0_2 = arith.constant 0 : index
    %5 = memref.load %arg2[%c0_1, %c0_2] : memref<4x3xf32, #tpu.memory_space<smem>>
    %6 = vector.broadcast %5 : f32 to vector<1x128xf32>
    %7 = arith.mulf %1, %6 : vector<1x128xf32>
    %c1 = arith.constant 1 : index
    %c0_3 = arith.constant 0 : index
    %8 = memref.load %arg2[%c1, %c0_3] : memref<4x3xf32, #tpu.memory_space<smem>>
    %9 = vector.broadcast %8 : f32 to vector<1x128xf32>
    %10 = arith.mulf %2, %9 : vector<1x128xf32>
    %11 = arith.addf %7, %10 : vector<1x128xf32>
    %c2 = arith.constant 2 : index
    %c0_4 = arith.constant 0 : index
    %12 = memref.load %arg2[%c2, %c0_4] : memref<4x3xf32, #tpu.memory_space<smem>>
    %13 = vector.broadcast %12 : f32 to vector<1x128xf32>
    %14 = arith.mulf %3, %13 : vector<1x128xf32>
    %15 = arith.addf %11, %14 : vector<1x128xf32>
    %c3 = arith.constant 3 : index
    %c0_5 = arith.constant 0 : index
    %16 = memref.load %arg2[%c3, %c0_5] : memref<4x3xf32, #tpu.memory_space<smem>>
    %17 = vector.broadcast %16 : f32 to vector<1x128xf32>
    %18 = arith.mulf %4, %17 : vector<1x128xf32>
    %19 = arith.addf %15, %18 : vector<1x128xf32>
    %c0_6 = arith.constant 0 : index
    %20 = memref.load %arg3[%c0_6] : memref<3xf32, #tpu.memory_space<smem>>
    %21 = vector.broadcast %20 : f32 to vector<1x128xf32>
    %22 = arith.addf %19, %21 : vector<1x128xf32>
    %cst = arith.constant 0.000000e+00 : f32
    %23 = vector.broadcast %cst : f32 to vector<1x128xf32>
    %24 = arith.maximumf %22, %23 : vector<1x128xf32>
    %c0_7 = arith.constant 0 : index
    %c1_8 = arith.constant 1 : index
    %25 = memref.load %arg2[%c0_7, %c1_8] : memref<4x3xf32, #tpu.memory_space<smem>>
    %26 = vector.broadcast %25 : f32 to vector<1x128xf32>
    %27 = arith.mulf %1, %26 : vector<1x128xf32>
    %c1_9 = arith.constant 1 : index
    %c1_10 = arith.constant 1 : index
    %28 = memref.load %arg2[%c1_9, %c1_10] : memref<4x3xf32, #tpu.memory_space<smem>>
    %29 = vector.broadcast %28 : f32 to vector<1x128xf32>
    %30 = arith.mulf %2, %29 : vector<1x128xf32>
    %31 = arith.addf %27, %30 : vector<1x128xf32>
    %c2_11 = arith.constant 2 : index
    %c1_12 = arith.constant 1 : index
    %32 = memref.load %arg2[%c2_11, %c1_12] : memref<4x3xf32, #tpu.memory_space<smem>>
    %33 = vector.broadcast %32 : f32 to vector<1x128xf32>
    %34 = arith.mulf %3, %33 : vector<1x128xf32>
    %35 = arith.addf %31, %34 : vector<1x128xf32>
    %c3_13 = arith.constant 3 : index
    %c1_14 = arith.constant 1 : index
    %36 = memref.load %arg2[%c3_13, %c1_14] : memref<4x3xf32, #tpu.memory_space<smem>>
    %37 = vector.broadcast %36 : f32 to vector<1x128xf32>
    %38 = arith.mulf %4, %37 : vector<1x128xf32>
    %39 = arith.addf %35, %38 : vector<1x128xf32>
    %c1_15 = arith.constant 1 : index
    %40 = memref.load %arg3[%c1_15] : memref<3xf32, #tpu.memory_space<smem>>
    %41 = vector.broadcast %40 : f32 to vector<1x128xf32>
    %42 = arith.addf %39, %41 : vector<1x128xf32>
    %cst_16 = arith.constant 0.000000e+00 : f32
    %43 = vector.broadcast %cst_16 : f32 to vector<1x128xf32>
    %44 = arith.maximumf %42, %43 : vector<1x128xf32>
    %c0_17 = arith.constant 0 : index
    %c2_18 = arith.constant 2 : index
    %45 = memref.load %arg2[%c0_17, %c2_18] : memref<4x3xf32, #tpu.memory_space<smem>>
    %46 = vector.broadcast %45 : f32 to vector<1x128xf32>
    %47 = arith.mulf %1, %46 : vector<1x128xf32>
    %c1_19 = arith.constant 1 : index
    %c2_20 = arith.constant 2 : index
    %48 = memref.load %arg2[%c1_19, %c2_20] : memref<4x3xf32, #tpu.memory_space<smem>>
    %49 = vector.broadcast %48 : f32 to vector<1x128xf32>
    %50 = arith.mulf %2, %49 : vector<1x128xf32>
    %51 = arith.addf %47, %50 : vector<1x128xf32>
    %c2_21 = arith.constant 2 : index
    %c2_22 = arith.constant 2 : index
    %52 = memref.load %arg2[%c2_21, %c2_22] : memref<4x3xf32, #tpu.memory_space<smem>>
    %53 = vector.broadcast %52 : f32 to vector<1x128xf32>
    %54 = arith.mulf %3, %53 : vector<1x128xf32>
    %55 = arith.addf %51, %54 : vector<1x128xf32>
    %c3_23 = arith.constant 3 : index
    %c2_24 = arith.constant 2 : index
    %56 = memref.load %arg2[%c3_23, %c2_24] : memref<4x3xf32, #tpu.memory_space<smem>>
    %57 = vector.broadcast %56 : f32 to vector<1x128xf32>
    %58 = arith.mulf %4, %57 : vector<1x128xf32>
    %59 = arith.addf %55, %58 : vector<1x128xf32>
    %c2_25 = arith.constant 2 : index
    %60 = memref.load %arg3[%c2_25] : memref<3xf32, #tpu.memory_space<smem>>
    %61 = vector.broadcast %60 : f32 to vector<1x128xf32>
    %62 = arith.addf %59, %61 : vector<1x128xf32>
    %cst_26 = arith.constant 0.000000e+00 : f32
    %63 = vector.broadcast %cst_26 : f32 to vector<1x128xf32>
    %64 = arith.maximumf %62, %63 : vector<1x128xf32>
    %c0_27 = arith.constant 0 : index
    %c0_28 = arith.constant 0 : index
    %65 = memref.load %arg4[%c0_27, %c0_28] : memref<3x2xf32, #tpu.memory_space<smem>>
    %66 = vector.broadcast %65 : f32 to vector<1x128xf32>
    %67 = arith.mulf %24, %66 : vector<1x128xf32>
    %c1_29 = arith.constant 1 : index
    %c0_30 = arith.constant 0 : index
    %68 = memref.load %arg4[%c1_29, %c0_30] : memref<3x2xf32, #tpu.memory_space<smem>>
    %69 = vector.broadcast %68 : f32 to vector<1x128xf32>
    %70 = arith.mulf %44, %69 : vector<1x128xf32>
    %71 = arith.addf %67, %70 : vector<1x128xf32>
    %c2_31 = arith.constant 2 : index
    %c0_32 = arith.constant 0 : index
    %72 = memref.load %arg4[%c2_31, %c0_32] : memref<3x2xf32, #tpu.memory_space<smem>>
    %73 = vector.broadcast %72 : f32 to vector<1x128xf32>
    %74 = arith.mulf %64, %73 : vector<1x128xf32>
    %75 = arith.addf %71, %74 : vector<1x128xf32>
    %c0_33 = arith.constant 0 : index
    %76 = memref.load %arg5[%c0_33] : memref<2xf32, #tpu.memory_space<smem>>
    %77 = vector.broadcast %76 : f32 to vector<1x128xf32>
    %78 = arith.addf %75, %77 : vector<1x128xf32>
    %c0_34 = arith.constant 0 : index
    %c1_35 = arith.constant 1 : index
    %79 = memref.load %arg4[%c0_34, %c1_35] : memref<3x2xf32, #tpu.memory_space<smem>>
    %80 = vector.broadcast %79 : f32 to vector<1x128xf32>
    %81 = arith.mulf %24, %80 : vector<1x128xf32>
    %c1_36 = arith.constant 1 : index
    %c1_37 = arith.constant 1 : index
    %82 = memref.load %arg4[%c1_36, %c1_37] : memref<3x2xf32, #tpu.memory_space<smem>>
    %83 = vector.broadcast %82 : f32 to vector<1x128xf32>
    %84 = arith.mulf %44, %83 : vector<1x128xf32>
    %85 = arith.addf %81, %84 : vector<1x128xf32>
    %c2_38 = arith.constant 2 : index
    %c1_39 = arith.constant 1 : index
    %86 = memref.load %arg4[%c2_38, %c1_39] : memref<3x2xf32, #tpu.memory_space<smem>>
    %87 = vector.broadcast %86 : f32 to vector<1x128xf32>
    %88 = arith.mulf %64, %87 : vector<1x128xf32>
    %89 = arith.addf %85, %88 : vector<1x128xf32>
    %c1_40 = arith.constant 1 : index
    %90 = memref.load %arg5[%c1_40] : memref<2xf32, #tpu.memory_space<smem>>
    %91 = vector.broadcast %90 : f32 to vector<1x128xf32>
    %92 = arith.addf %89, %91 : vector<1x128xf32>
    %93 = tpu.concatenate %78, %92 in 0 : vector<1x128xf32>, vector<1x128xf32> -> vector<2x128xf32>
    %c0_41 = arith.constant 0 : index
    %c0_42 = arith.constant 0 : index
    %94 = vector.load %arg6[%c0_41, %c0_42] : memref<2x128xf32, #tpu.memory_space<vmem>>, vector<2x128xf32>
    tpu.vector_store %arg6[%c0_41, %c0_42], %93 {strides = array<i32>} : memref<2x128xf32, #tpu.memory_space<vmem>>, vector<2x128xf32>,
    return
  }
  func.func @transform_0(%arg0: i32) -> (i32, i32) {
    %c0_i32 = arith.constant 0 : i32
    %c0_i32_0 = arith.constant 0 : i32
    return %c0_i32, %arg0 : i32, i32
  }
  func.func @transform_1(%arg0: i32) -> (i32, i32) {
    %c0_i32 = arith.constant 0 : i32
    %c0_i32_0 = arith.constant 0 : i32
    %c0_i32_1 = arith.constant 0 : i32
    return %c0_i32, %c0_i32_0 : i32, i32
  }
  func.func @transform_2(%arg0: i32) -> i32 {
    %c0_i32 = arith.constant 0 : i32
    %c0_i32_0 = arith.constant 0 : i32
    return %c0_i32 : i32
  }
  func.func @transform_3(%arg0: i32) -> (i32, i32) {
    %c0_i32 = arith.constant 0 : i32
    %c0_i32_0 = arith.constant 0 : i32
    %c0_i32_1 = arith.constant 0 : i32
    return %c0_i32, %c0_i32_0 : i32, i32
  }
  func.func @transform_4(%arg0: i32) -> i32 {
    %c0_i32 = arith.constant 0 : i32
    %c0_i32_0 = arith.constant 0 : i32
    return %c0_i32 : i32
  }
  func.func @transform_5(%arg0: i32) -> (i32, i32) {
    %c0_i32 = arith.constant 0 : i32
    %c0_i32_0 = arith.constant 0 : i32
    return %c0_i32, %arg0 : i32, i32
  }
}

</mosaic_0001>

<bundles_post_ra>
// kernel: tpu_custom_call.1
= control target key start
LH: loop header
LB: loop body
LE: loop exit
PB: predicated region body
PF: predicated region fallthrough
CT: control target
= control target key end

     0   :  { %10 = vsyncpa [#allocation4], 0  ;;  %s405_s0 = inlined_call_operand.vmem [shape: f32[4,128], index: 0, kind: input, shape index: {}]   ;;  %s406_s1 = inlined_call_operand.vmem [shape: f32[4,3], index: 1, kind: input, shape index: {}]   ;;  %s407_s2 = inlined_call_operand.vmem [shape: f32[3], index: 2, kind: input, shape index: {}]   ;;  %s408_s3 = inlined_call_operand.vmem [shape: f32[3,2], index: 3, kind: input, shape index: {}]   ;;  %s409_s4 = inlined_call_operand.vmem [shape: f32[2], index: 4, kind: input, shape index: {}]   ;;  %s410_s5 = inlined_call_operand.hbm [shape: f32[2,128], index: 5, kind: output, shape index: {}]  }
   0x1   :  { %11 = vsyncpa [#allocation6], 0 }
   0x2   :  { %12 = vsyncpa [#allocation9], 0  ;;  %s32_s20 = sshll.u32 %s407_s2, 4  ;;  %s33_s20 = int_to_ptr.vmem [resolvable:$true] %s32_s20 }
   0x3   :  { %13 = vsyncpa [#allocation3], 0  ;;  %s22_s23 = sshll.u32 %s406_s1, 4  ;;  %s229_s24 = scalar_lea.vmem %s33_s20, 16  ;;  %s23_s23 = int_to_ptr.vmem [resolvable:$true] %s22_s23 }
   0x4   :  { %p230_p0 = scmp.ne.s32.totalorder %s33_s20, %s229_s24  ;;  %p234_p1 = scmp.lt.s32.totalorder %s33_s20, %s33_s20 }
   0x5   :  { %p235_p2 = scmp.lt.s32.totalorder %s229_s24, %s229_s24 }
   0x7   :  { %p236_p3 = por %p235_p2, %p234_p1 }
   0x9   :  { %p237_p4 = pnand %p236_p3, %p230_p0 }
   0xb   :  { %240 = shalt.err (!%p237_p4)
}
   0xc   :  { %s307_s25 = smov [#allocation5]   ;;  %s241_s26 = scalar_lea.vmem %s23_s23, 64 }
   0xd   :  { %35 = dma.vmem_to_smem %s33_s20, 16, %s307_s25, [#allocation6]  }
   0xe   :  { %p242_p5 = scmp.ne.s32.totalorder %s23_s23, %s241_s26  ;;  %p246_p6 = scmp.lt.s32.totalorder %s23_s23, %s23_s23 }
   0xf   :  { %p247_p7 = scmp.lt.s32.totalorder %s241_s26, %s241_s26 }
  0x11   :  { %p248_p8 = por %p247_p7, %p246_p6 }
  0x13   :  { %p249_p9 = pnand %p248_p8, %p242_p5 }
  0x15   :  { %252 = shalt.err (!%p249_p9)
}
  0x16   :  { %s308_s2 = smov [#allocation2]   ;;  %s42_s28 = sshll.u32 %s408_s3, 4  ;;  %s43_s28 = int_to_ptr.vmem [resolvable:$true] %s42_s28 }
  0x17   :  { %25 = dma.vmem_to_smem %s23_s23, 64, %s308_s2, [#allocation4]  }
  0x18   :  { %s52_s6 = sshll.u32 %s409_s4, 4  ;;  %s253_s7 = scalar_lea.vmem %s43_s28, 64  ;;  %s53_s6 = int_to_ptr.vmem [resolvable:$true] %s52_s6 }
  0x19   :  { %p254_p10 = scmp.ne.s32.totalorder %s43_s28, %s253_s7  ;;  %p258_p11 = scmp.lt.s32.totalorder %s43_s28, %s43_s28 }
  0x1a   :  { %p259_p12 = scmp.lt.s32.totalorder %s253_s7, %s253_s7 }
  0x1c   :  { %p260_p13 = por %p259_p12, %p258_p11 }
  0x1e   :  { %p261_p0 = pnand %p260_p13, %p254_p10 }
  0x20   :  { %264 = shalt.err (!%p261_p0)
}
  0x21   :  { %s309_s8 = smov [#allocation7]   ;;  %s265_s9 = scalar_lea.vmem %s53_s6, 16 }
  0x22   :  { %45 = dma.vmem_to_smem %s43_s28, 64, %s309_s8, [#allocation6]  }
  0x23   :  { %p266_p1 = scmp.ne.s32.totalorder %s53_s6, %s265_s9  ;;  %p270_p2 = scmp.lt.s32.totalorder %s53_s6, %s53_s6 }
  0x24   :  { %p271_p3 = scmp.lt.s32.totalorder %s265_s9, %s265_s9 }
  0x26   :  { %p272_p4 = por %p271_p3, %p270_p2 }
  0x28   :  { %p273_p5 = pnand %p272_p4, %p266_p1 }
  0x2a   :  { %276 = shalt.err (!%p273_p5)
}
  0x2b   :  { %s310_s3 = smov [#allocation8]  }
  0x2c   :  { %55 = dma.vmem_to_smem %s53_s6, 16, %s310_s3, [#allocation9]  }
  0x2d   :  { %299 = dma.done.wait [#allocation4], 64  }
  0x2e   :  { %300 = vsyncadd [#allocation4], 4294967232 }
  0x2f   :  { %301 = dma.done.wait [#allocation6], 80  }
  0x30   :  { %302 = vsyncadd [#allocation6], 4294967216 }
  0x31   :  { %303 = dma.done.wait [#allocation9], 16  }
  0x32   :  { %304 = vsyncadd [#allocation9], 4294967280 }
  0x33   :  { %68 = sfence }
  0x34   :  { %s70_s4 = sld [smem:[#allocation2]]  ;;  %s208_s14 = sld [smem:[#allocation2 + $0x1]]  ;;  %v69_v0 = vld [vmem:[%s405_s0] sm:$0xf]  ;;  %vm185_vm0 = vcmask 1040384  }
  0x35   :  { %s205_s10 = sld [smem:[#allocation2 + $0x80]]  ;;  %s209_s15 = sld [smem:[#allocation2 + $0x81]] }
  0x36   :  { %s206_s11 = sld [smem:[#allocation2 + $0x100]]  ;;  %s210_s16 = sld [smem:[#allocation2 + $0x101]] }
  0x37   :  { %s207_s12 = sld [smem:[#allocation2 + $0x180]]  ;;  %s359_s19 = sld [smem:[#allocation2 + $0x181]] }
  0x38   :  { %s354_s13 = sld [smem:[#allocation5]]  ;;  %s361_s20 = sld [smem:[#allocation2 + $0x2]] }
  0x39   :  { %s363_s21 = sld [smem:[#allocation2 + $0x82]]  ;;  %s370_s0 = sld [smem:[#allocation5 + $0x1]] }
  0x3a   :  { %v71_v1 = vstv %s70_s4  ;;  %s365_s22 = sld [smem:[#allocation2 + $0x102]]  ;;  %v99_v9 = vstv %s208_s14  ;;  %s374_s24 = sld [smem:[#allocation7]] }
  0x3b   :  { %v74_v2 = vstv %s205_s10  ;;  %s367_s23 = sld [smem:[#allocation2 + $0x182]]  ;;  %v72_v3 = vmul.f32 %v71_v1, %v69_v0  ;;  %v102_v12 = vstv %s209_s15  ;;  %v100_v15 = vmul.f32 %v99_v9, %v69_v0  ;;  %s376_s25 = sld [smem:[#allocation7 + $0x1]] }
  0x3c   :  { %v75_v4 = vmul.f32 %v74_v2, %v69_v0  ;;  %v81_v5 = vstv %s206_s11  ;;  %v109_v13 = vstv %s210_s16  ;;  %v103_v16 = vmul.f32 %v102_v12, %v69_v0  ;;  %s378_s26 = sld [smem:[#allocation5 + $0x2]]  ;;  %s383_s2 = sld [smem:[#allocation7 + $0x80]] }
  0x3d   :  { %v88_v6 = vstv %s207_s12  ;;  %v82_v7 = vmul.f32 %v81_v5, %v69_v0  ;;  %v110_v17 = vmul.f32 %v109_v13, %v69_v0  ;;  %v116_v20 = vstv %s359_s19  ;;  %s385_s1 = sld [smem:[#allocation7 + $0x81]]  ;;  %s219_s27 = sld [smem:[#allocation7 + $0x100]] }
  0x3e   :  { %v89_v8 = vmul.f32 %v88_v6, %v69_v0  ;;  %v77_v10 = vrot.slane %v75_v4, 1  ;;  %v95_v11 = vstv %s354_s13  ;;  %v127_v21 = vstv %s361_s20  ;;  %s222_s28 = sld [smem:[#allocation7 + $0x101]]  ;;  %s165_s29 = sld [smem:[#allocation8]] }
  0x3f   :  { %v84_v14 = vrot.slane %v82_v7, 2  ;;  %v105_v22 = vrot.slane %v103_v16, 1  ;;  %v112_v23 = vrot.slane %v110_v17, 2  ;;  %v117_v24 = vmul.f32 %v116_v20, %v69_v0  ;;  %s223_s30 = sld [smem:[#allocation8 + $0x1]]  ;;  %s311_s6 = smov [#allocation10]  }
  0x40   :  { %v79_v18 = vadd.f32 %v77_v10, %v72_v3  ;;  %v91_v19 = vrot.slane %v89_v8, 3  ;;  %v128_v25 = vmul.f32 %v127_v21, %v69_v0  ;;  %v130_v27 = vstv %s363_s21  ;;  %s194_s7 = sshll.u32 %s311_s6, 4  ;;  %s195_s7 = int_to_ptr.vmem [resolvable:$true] %s194_s7 }
  0x41   :  { %v137_v28 = vstv %s365_s22  ;;  %v144_v29 = vstv %s367_s23  ;;  %v107_v30 = vadd.f32 %v105_v22, %v100_v15  ;;  %v119_v31 = vrot.slane %v117_v24, 3  ;;  %s277_s8 = scalar_lea.vmem %s195_s7, 32  ;;  %p282_p7 = scmp.lt.s32.totalorder %s195_s7, %s195_s7 }
  0x42   :  { %v86_v26 = vadd.f32 %v84_v14, %v79_v18  ;;  %v131_v32 = vmul.f32 %v130_v27, %v69_v0  ;;  %v138_v33 = vmul.f32 %v137_v28, %v69_v0  ;;  %v145_v35 = vmul.f32 %v144_v29, %v69_v0  ;;  %p278_p6 = scmp.ne.s32.totalorder %s195_s7, %s277_s8  ;;  %p283_p8 = scmp.lt.s32.totalorder %s277_s8, %s277_s8 }
  0x43   :  { %v114_v36 = vadd.f32 %v112_v23, %v107_v30  ;;  %v123_v40 = vstv %s370_s0  ;;  %v155_v45 = vstv %s374_s24  ;;  %v169_v46 = vstv %s376_s25 }
  0x44   :  { %v93_v34 = vadd.f32 %v91_v19, %v86_v26  ;;  %v133_v37 = vrot.slane %v131_v32, 1  ;;  %v140_v38 = vrot.slane %v138_v33, 2  ;;  %v147_v43 = vrot.slane %v145_v35, 3  ;;  %p284_p9 = por %p283_p8, %p282_p7 }
  0x45   :  { %v121_v41 = vadd.f32 %v119_v31, %v114_v36  ;;  %v151_v49 = vstv %s378_s26  ;;  %v158_v50 = vstv %s383_s2  ;;  %v172_v51 = vstv %s385_s1 }
  0x46   :  { %v96_v39 = vadd.f32 %v95_v11, %v93_v34  ;;  %v135_v42 = vadd.f32 %v133_v37, %v128_v25  ;;  %v162_v59 = vstv %s219_s27  ;;  %v176_v60 = vstv %s222_s28  ;;  %p285_p10 = pnand %p284_p9, %p278_p6 }
  0x47   :  { %v124_v47 = vadd.f32 %v123_v40, %v121_v41  ;;  %v166_v2 = vstv %s165_s29  ;;  %v180_v3 = vstv %s223_s30 }
  0x48   :  { %v97_v44 = vmax.f32 %v96_v39, 0.0  ;;  %v142_v48 = vadd.f32 %v140_v38, %v135_v42 }
  0x49   :  { %v125_v52 = vmax.f32 %v124_v47, 0.0 }
  0x4a   :  { %v149_v53 = vadd.f32 %v147_v43, %v142_v48  ;;  %v156_v54 = vmul.f32 %v155_v45, %v97_v44  ;;  %v170_v55 = vmul.f32 %v169_v46, %v97_v44 }
  0x4b   :  { %v159_v57 = vmul.f32 %v158_v50, %v125_v52  ;;  %v173_v58 = vmul.f32 %v172_v51, %v125_v52 }
  0x4c   :  { %v152_v56 = vadd.f32 %v151_v49, %v149_v53 }
  0x4d   :  { %v160_v62 = vadd.f32 %v159_v57, %v156_v54  ;;  %v174_v63 = vadd.f32 %v173_v58, %v170_v55 }
  0x4e   :  { %v153_v61 = vmax.f32 %v152_v56, 0.0 }
  0x50   :  { %v163_v0 = vmul.f32 %v162_v59, %v153_v61  ;;  %v177_v1 = vmul.f32 %v176_v60, %v153_v61 }
  0x52   :  { %v164_v4 = vadd.f32 %v163_v0, %v160_v62  ;;  %v178_v5 = vadd.f32 %v177_v1, %v174_v63 }
  0x54   :  { %v167_v6 = vadd.f32 %v166_v2, %v164_v4  ;;  %v181_v7 = vadd.f32 %v180_v3, %v178_v5 }
  0x56   :  { %v183_v8 = vrot.slane %v181_v7, 7 }
  0x58   :  { %v186_v9 = vsel %vm185_vm0, %v167_v6, %v183_v8 }
  0x59   :  { %187 = vst [vmem:[#allocation10] sm:$0x3] %v186_v9 }
  0x5a   :  { %288 = shalt.err (!%p285_p10)
}
  0x5b   :  { %s289_s4 = scalar_lea.hbm %s410_s5, 32 }
  0x5c   :  { %p290_p11 = scmp.ne.s32.totalorder %s410_s5, %s289_s4  ;;  %p293_p12 = scmp.lt.u32.totalorder %s289_s4, %s410_s5 }
  0x5e   :  { %p295_p13 = pnand %p293_p12, %p290_p11 }
  0x60   :  { %298 = shalt.err (!%p295_p13)
}
  0x61   :  { %197 = dma.vmem_to_hbm [thread:$0]  %s195_s7, 32, %s410_s5, [#allocation3]  }
  0x62   :  { %305 = dma.done.wait [#allocation3], 32  }
  0x63   :  { %306 = vsyncadd [#allocation3], 4294967264 }
  0x64   :  { %201 = vsyncpa [#allocation3], 1 }
  0x65   :  { %202 = vsyncpa [#allocation4], 1 }
  0x66   :  { %203 = vsyncpa [#allocation6], 1 }
  0x67   :  { %204 = vsyncpa [#allocation9], 1 }

</bundles_post_ra>
